<compile_context>
chip_gen: v7x
topology: tpu7x:2x2x1
jax: 0.10.0
libtpu: 0.0.40
codegen_flags: <defaults>
</compile_context>

<pallas_src>
import jax
import jax.numpy as jnp
import numpy as np
from jax.experimental import pallas as pl
from jax.experimental.pallas import tpu as pltpu


# ----------------------------------------------------------------------------
# Kernel
# ----------------------------------------------------------------------------
def make_kernel(objective: str, inv_total: float, B: int, C: int):
    """objective in {'pred_noise', 'pred_x0', 'pred_v'} (static)."""

    def kernel(
        # scalars (SMEM)
        t_ref,                   # (B,)  int32 timestep indices
        sqrt_ac_ref,             # (T,)  sqrt(alphas_cumprod)
        sqrt_1mac_ref,           # (T,)  sqrt(1 - alphas_cumprod)
        # tensors (VMEM), lane-dense: channels on sublanes, HW on lanes
        x0_ref,                  # (B, C, HW) bf16
        noise_ref,               # (B, C, HW) bf16
        cond_ref,                # (B, C, HW) bf16
        w1t_ref,                 # (Hd, 2C) f32   fused [W1x; W1c]^T
        temb_ref,                # (B, Hd, 1) f32 per-example temb[t] + b1
        w2t_ref,                 # (C, Hd) f32    W2^T
        b2_ref,                  # (C, 1)  f32
        # outputs
        xt_ref,                  # (B, C, HW) f32
        loss_ref,                # (1, 1) f32
    ):
        loss_total = None
        # B is tiny and static -> unroll; whole batch handled in one grid step.
        for b in range(B):
            # --- extract(): gather schedule coefficients for this batch element
            t_b = t_ref[b]
            a = sqrt_ac_ref[t_b]              # sqrt(alpha_bar_t)
            s = sqrt_1mac_ref[t_b]            # sqrt(1 - alpha_bar_t)

            x0 = x0_ref[b].astype(jnp.float32)       # (C, HW)
            noise = noise_ref[b].astype(jnp.float32)
            cond = cond_ref[b].astype(jnp.float32)

            # --- add_noise (q-sample), f32 elementwise math
            x_t = x0 * a + noise * s
            xt_ref[b] = x_t                          # full-lane (C, HW) store

            # --- synthetic inner model, transposed (lane-dense) formulation
            xc = jnp.concatenate([x_t, cond], axis=0)           # (2C, HW)
            h = (
                jnp.dot(w1t_ref[...], xc, preferred_element_type=jnp.float32)
                + temb_ref[b]                                   # (Hd, 1) lane-bcast
            )
            h = jnp.maximum(h, 0.0)
            model_out = (
                jnp.dot(w2t_ref[...], h, preferred_element_type=jnp.float32)
                + b2_ref[...]                                   # (C, 1) lane-bcast
            )                                                   # (C, HW)

            # --- target selection (static objective)
            if objective == "pred_noise":
                target = noise
            elif objective == "pred_x0":
                target = x0
            else:  # 'pred_v'
                target = a * noise - s * x0

            # --- partial MSE for this batch element
            d = model_out - target
            sq = jnp.sum(d * d, axis=1, keepdims=True)          # (C, 1)
            sq = jnp.sum(sq, axis=0, keepdims=True)             # (1, 1)
            loss_total = sq if loss_total is None else loss_total + sq

        # mean scale applied exactly once
        loss_ref[...] = loss_total * inv_total

    return kernel


# ----------------------------------------------------------------------------
# Wrapper
# ----------------------------------------------------------------------------
def diffusion_forward(params, x0_nchw, cond_nchw, t, noise_nchw,
                      objective: str = "pred_noise"):
    B, C, H, W = x0_nchw.shape
    HW = H * W
    Hd = params["w1x"].shape[1]

    # Lane-dense activations: (B, C, HW) with HW on the lane axis; bf16 to
    # halve the HBM read bytes of the three large tensors.
    act_dtype = jnp.bfloat16
    x0f = x0_nchw.reshape(B, C, HW).astype(act_dtype)
    noisef = noise_nchw.reshape(B, C, HW).astype(act_dtype)
    condf = cond_nchw.reshape(B, C, HW).astype(act_dtype)

    # Fused / transposed weights for the out^T = W^T @ x^T formulation.
    w1t = jnp.concatenate([params["w1x"], params["w1c"]], axis=0).T   # (Hd, 2C)
    w2t = params["w2"].T                                              # (C, Hd)
    b2t = params["b2"].reshape(C, 1)                                  # (C, 1)
    # Per-example time-embedding rows with b1 folded in: (B, Hd, 1).
    temb_t = (params["temb"][t].reshape(B, Hd)
              + params["b1"].reshape(Hd))[..., None]

    inv_total = 1.0 / float(B * HW * C)
    kernel = make_kernel(objective, inv_total, B, C)

    smem = pl.BlockSpec(memory_space=pltpu.MemorySpace.SMEM)

    xt_flat, loss = pl.pallas_call(
        kernel,
        grid=(1,),                               # single fused step (batch unrolled)
        in_specs=[
            smem,                                # t
            smem,                                # sqrt(alphas_cumprod)
            smem,                                # sqrt(1 - alphas_cumprod)
            pl.BlockSpec((B, C, HW), lambda i: (0, 0, 0)),   # x0
            pl.BlockSpec((B, C, HW), lambda i: (0, 0, 0)),   # noise
            pl.BlockSpec((B, C, HW), lambda i: (0, 0, 0)),   # cond
            pl.BlockSpec((Hd, 2 * C), lambda i: (0, 0)),     # fused W1^T
            pl.BlockSpec((B, Hd, 1), lambda i: (0, 0, 0)),   # temb[t] + b1
            pl.BlockSpec((C, Hd), lambda i: (0, 0)),         # W2^T
            pl.BlockSpec((C, 1), lambda i: (0, 0)),          # b2
        ],
        out_specs=(
            pl.BlockSpec((B, C, HW), lambda i: (0, 0, 0)),   # x_t
            pl.BlockSpec((1, 1), lambda i: (0, 0)),          # loss
        ),
        out_shape=(
            jax.ShapeDtypeStruct((B, C, HW), jnp.float32),
            jax.ShapeDtypeStruct((1, 1), jnp.float32),
        ),
        compiler_params=pltpu.CompilerParams(
            dimension_semantics=("arbitrary",),
        ),
    )(
        t, params["sqrt_ac"], params["sqrt_1mac"],
        x0f, noisef, condf,
        w1t, temb_t, w2t, b2t,
    )

    x_t = xt_flat.reshape(B, C, H, W)            # back to NCHW (pure reshape)
    return loss[0, 0], x_t


# ----------------------------------------------------------------------------
# Deterministic parameter construction (synthetic; no checkpoint loading)
# ----------------------------------------------------------------------------
def make_params(num_timesteps, channels, hidden, beta_start=1e-4, beta_end=0.02):
    betas = jnp.linspace(beta_start, beta_end, num_timesteps, dtype=jnp.float32)
    alphas = 1.0 - betas
    alphas_cumprod = jnp.cumprod(alphas)
    sqrt_ac = jnp.sqrt(alphas_cumprod)
    sqrt_1mac = jnp.sqrt(1.0 - alphas_cumprod)

    k = jax.random.PRNGKey(42)
    k1, k2, k3, k4 = jax.random.split(k, 4)
    params = {
        "sqrt_ac": sqrt_ac,
        "sqrt_1mac": sqrt_1mac,
        "w1x": 0.2 * jax.random.normal(k1, (channels, hidden), jnp.float32),
        "w1c": 0.2 * jax.random.normal(k2, (channels, hidden), jnp.float32),
        "temb": 0.1 * jax.random.normal(k3, (num_timesteps, 1, hidden), jnp.float32),
        "b1": jnp.zeros((1, hidden), jnp.float32),
        "w2": 0.2 * jax.random.normal(k4, (hidden, channels), jnp.float32),
        "b2": jnp.zeros((1, channels), jnp.float32),
    }
    return params


# ----------------------------------------------------------------------------
# Pure-JAX reference (mirrors the PyTorch forward semantics and the kernel's
# mixed-precision policy: bf16 activation storage, all math in f32)
# ----------------------------------------------------------------------------
def reference_forward(params, x0, cond, t, noise, objective="pred_noise"):
    B, C, H, W = x0.shape
    HW = H * W
    x0f = x0.reshape(B, C, HW).astype(jnp.bfloat16).astype(jnp.float32)
    nf = noise.reshape(B, C, HW).astype(jnp.bfloat16).astype(jnp.float32)
    cf = cond.reshape(B, C, HW).astype(jnp.bfloat16).astype(jnp.float32)

    a = params["sqrt_ac"][t][:, None, None]
    s = params["sqrt_1mac"][t][:, None, None]
    x_t = x0f * a + nf * s                                   # (B, C, HW)

    # model in natural (pixels, channels) layout
    xt_pc = jnp.swapaxes(x_t, 1, 2)                          # (B, HW, C)
    c_pc = jnp.swapaxes(cf, 1, 2)
    h = (xt_pc @ params["w1x"] + c_pc @ params["w1c"]
         + params["temb"][t] + params["b1"])
    h = jnp.maximum(h, 0.0)
    out = h @ params["w2"] + params["b2"]                    # (B, HW, C)

    if objective == "pred_noise":
        target = jnp.swapaxes(nf, 1, 2)
    elif objective == "pred_x0":
        target = jnp.swapaxes(x0f, 1, 2)
    else:
        target = jnp.swapaxes(a * nf - s * x0f, 1, 2)

    loss = jnp.mean((out - target) ** 2)
    return loss, x_t.reshape(B, C, H, W)


# ----------------------------------------------------------------------------
if __name__ == "__main__":
    B, C, H, W = 2, 4, 16, 16
    T, HIDDEN = 100, 32

    params = make_params(T, C, HIDDEN)

    key = jax.random.PRNGKey(0)
    k_x, k_c, k_n, k_t = jax.random.split(key, 4)
    x0 = jax.random.normal(k_x, (B, C, H, W), jnp.float32)
    cond = jax.random.normal(k_c, (B, C, H, W), jnp.float32)
    noise = jax.random.normal(k_n, (B, C, H, W), jnp.float32)
    t = jax.random.randint(k_t, (B,), 0, T, dtype=jnp.int32)

    loss_k, xt_k = diffusion_forward(params, x0, cond, t, noise,
                                     objective="pred_noise")
    loss_k = jax.block_until_ready(loss_k)
    xt_k = jax.block_until_ready(xt_k)

    loss_r, xt_r = reference_forward(params, x0, cond, t, noise,
                                     objective="pred_noise")

    np.testing.assert_allclose(np.asarray(xt_k), np.asarray(xt_r),
                               rtol=1e-5, atol=1e-5)
    np.testing.assert_allclose(np.asarray(loss_k), np.asarray(loss_r),
                               rtol=5e-3, atol=1e-6)

    print("KERNEL_OK")
</pallas_src>

<mosaic_0001>
module attributes {stable_mosaic.version = 11 : i64} {
  func.func @kernel(%arg0: i32, %arg1: memref<2xi32, #tpu.memory_space<smem>>, %arg2: memref<100xf32, #tpu.memory_space<smem>>, %arg3: memref<100xf32, #tpu.memory_space<smem>>, %arg4: memref<2x4x256xbf16, #tpu.memory_space<vmem>>, %arg5: memref<2x4x256xbf16, #tpu.memory_space<vmem>>, %arg6: memref<2x4x256xbf16, #tpu.memory_space<vmem>>, %arg7: memref<32x8xf32, #tpu.memory_space<vmem>>, %arg8: memref<2x32x1xf32, #tpu.memory_space<vmem>>, %arg9: memref<4x32xf32, #tpu.memory_space<vmem>>, %arg10: memref<4x1xf32, #tpu.memory_space<vmem>>, %arg11: memref<2x4x256xf32, #tpu.memory_space<vmem>>, %arg12: memref<1x1xf32, #tpu.memory_space<vmem>>) attributes {dimension_semantics = [#tpu.dimension_semantics<arbitrary>], iteration_bounds = array<i64: 1>, scalar_prefetch = 0 : i64, scratch_operands = 0 : i64, tpu.core_type = #tpu.core_type<tc>, window_params = [{transform_indices = @transform_0, window_bounds = array<i64: 2>}, {transform_indices = @transform_1, window_bounds = array<i64: 100>}, {transform_indices = @transform_2, window_bounds = array<i64: 100>}, {pipeline_mode = #tpu.pipeline_mode<synchronous>, transform_indices = @transform_3, window_bounds = array<i64: 2, 4, 256>}, {pipeline_mode = #tpu.pipeline_mode<synchronous>, transform_indices = @transform_4, window_bounds = array<i64: 2, 4, 256>}, {pipeline_mode = #tpu.pipeline_mode<synchronous>, transform_indices = @transform_5, window_bounds = array<i64: 2, 4, 256>}, {pipeline_mode = #tpu.pipeline_mode<synchronous>, transform_indices = @transform_6, window_bounds = array<i64: 32, 8>}, {pipeline_mode = #tpu.pipeline_mode<synchronous>, transform_indices = @transform_7, window_bounds = array<i64: 2, 32, 1>}, {pipeline_mode = #tpu.pipeline_mode<synchronous>, transform_indices = @transform_8, window_bounds = array<i64: 4, 32>}, {pipeline_mode = #tpu.pipeline_mode<synchronous>, transform_indices = @transform_9, window_bounds = array<i64: 4, 1>}, {pipeline_mode = #tpu.pipeline_mode<synchronous>, transform_indices = @transform_10, window_bounds = array<i64: 2, 4, 256>}, {pipeline_mode = #tpu.pipeline_mode<synchronous>, transform_indices = @transform_11, window_bounds = array<i64: 1, 1>}]} {
    %c0 = arith.constant 0 : index
    %0 = memref.load %arg1[%c0] : memref<2xi32, #tpu.memory_space<smem>>
    %1 = arith.index_cast %0 : i32 to index
    %2 = memref.load %arg2[%1] : memref<100xf32, #tpu.memory_space<smem>>
    %3 = arith.index_cast %0 : i32 to index
    %4 = memref.load %arg3[%3] : memref<100xf32, #tpu.memory_space<smem>>
    %c0_0 = arith.constant 0 : index
    %c0_1 = arith.constant 0 : index
    %c0_2 = arith.constant 0 : index
    %5 = vector.load %arg4[%c0_0, %c0_1, %c0_2] : memref<2x4x256xbf16, #tpu.memory_space<vmem>>, vector<1x4x256xbf16>
    %6 = vector.shape_cast %5 : vector<1x4x256xbf16> to vector<4x256xbf16>
    %7 = arith.extf %6 : vector<4x256xbf16> to vector<4x256xf32>
    %c0_3 = arith.constant 0 : index
    %c0_4 = arith.constant 0 : index
    %c0_5 = arith.constant 0 : index
    %8 = vector.load %arg5[%c0_3, %c0_4, %c0_5] : memref<2x4x256xbf16, #tpu.memory_space<vmem>>, vector<1x4x256xbf16>
    %9 = vector.shape_cast %8 : vector<1x4x256xbf16> to vector<4x256xbf16>
    %10 = arith.extf %9 : vector<4x256xbf16> to vector<4x256xf32>
    %c0_6 = arith.constant 0 : index
    %c0_7 = arith.constant 0 : index
    %c0_8 = arith.constant 0 : index
    %11 = vector.load %arg6[%c0_6, %c0_7, %c0_8] : memref<2x4x256xbf16, #tpu.memory_space<vmem>>, vector<1x4x256xbf16>
    %12 = vector.shape_cast %11 : vector<1x4x256xbf16> to vector<4x256xbf16>
    %13 = arith.extf %12 : vector<4x256xbf16> to vector<4x256xf32>
    %14 = vector.broadcast %2 : f32 to vector<4x256xf32>
    %15 = arith.mulf %7, %14 : vector<4x256xf32>
    %16 = vector.broadcast %4 : f32 to vector<4x256xf32>
    %17 = arith.mulf %10, %16 : vector<4x256xf32>
    %18 = arith.addf %15, %17 : vector<4x256xf32>
    %c0_9 = arith.constant 0 : index
    %c0_10 = arith.constant 0 : index
    %c0_11 = arith.constant 0 : index
    %19 = vector.load %arg11[%c0_9, %c0_10, %c0_11] : memref<2x4x256xf32, #tpu.memory_space<vmem>>, vector<1x4x256xf32>
    %20 = vector.shape_cast %19 : vector<1x4x256xf32> to vector<4x256xf32>
    %21 = vector.shape_cast %18 : vector<4x256xf32> to vector<1x4x256xf32>
    tpu.vector_store %arg11[%c0_9, %c0_10, %c0_11], %21 {strides = array<i32>} : memref<2x4x256xf32, #tpu.memory_space<vmem>>, vector<1x4x256xf32>,
    %22 = tpu.concatenate %18, %13 in 0 : vector<4x256xf32>, vector<4x256xf32> -> vector<8x256xf32>
    %c0_12 = arith.constant 0 : index
    %c0_13 = arith.constant 0 : index
    %23 = vector.load %arg7[%c0_12, %c0_13] : memref<32x8xf32, #tpu.memory_space<vmem>>, vector<32x8xf32>
    %cst = arith.constant dense<0.000000e+00> : vector<32x256xf32>
    %24 = tpu.matmul %23, %22, %cst {dimension_numbers = #tpu.dot_dimension_numbers<[1], [0], [0], [1], [0, 0, 1, 1], [], []>} : vector<32x8xf32>, vector<8x256xf32>, vector<32x256xf32> -> vector<32x256xf32>
    %c0_14 = arith.constant 0 : index
    %c0_15 = arith.constant 0 : index
    %c0_16 = arith.constant 0 : index
    %25 = vector.load %arg8[%c0_14, %c0_15, %c0_16] : memref<2x32x1xf32, #tpu.memory_space<vmem>>, vector<1x32x1xf32>
    %26 = vector.shape_cast %25 : vector<1x32x1xf32> to vector<32x1xf32>
    %27 = vector.broadcast %26 : vector<32x1xf32> to vector<32x256xf32>
    %28 = arith.addf %24, %27 : vector<32x256xf32>
    %cst_17 = arith.constant 0.000000e+00 : f32
    %29 = vector.broadcast %cst_17 : f32 to vector<32x256xf32>
    %30 = arith.maximumf %28, %29 : vector<32x256xf32>
    %c0_18 = arith.constant 0 : index
    %c0_19 = arith.constant 0 : index
    %31 = vector.load %arg9[%c0_18, %c0_19] : memref<4x32xf32, #tpu.memory_space<vmem>>, vector<4x32xf32>
    %cst_20 = arith.constant dense<0.000000e+00> : vector<4x256xf32>
    %32 = tpu.matmul %31, %30, %cst_20 {dimension_numbers = #tpu.dot_dimension_numbers<[1], [0], [0], [1], [0, 0, 1, 1], [], []>} : vector<4x32xf32>, vector<32x256xf32>, vector<4x256xf32> -> vector<4x256xf32>
    %c0_21 = arith.constant 0 : index
    %c0_22 = arith.constant 0 : index
    %33 = vector.load %arg10[%c0_21, %c0_22] : memref<4x1xf32, #tpu.memory_space<vmem>>, vector<4x1xf32>
    %34 = vector.broadcast %33 : vector<4x1xf32> to vector<4x256xf32>
    %35 = arith.addf %32, %34 : vector<4x256xf32>
    %36 = arith.subf %35, %10 : vector<4x256xf32>
    %37 = arith.mulf %36, %36 : vector<4x256xf32>
    %cst_23 = arith.constant dense<0.000000e+00> : vector<4xf32>
    %38 = vector.multi_reduction <add>, %37, %cst_23 [1] : vector<4x256xf32> to vector<4xf32>
    %39 = vector.shape_cast %38 : vector<4xf32> to vector<4x1xf32>
    %cst_24 = arith.constant dense<0.000000e+00> : vector<1xf32>
    %40 = vector.multi_reduction <add>, %39, %cst_24 [0] : vector<4x1xf32> to vector<1xf32>
    %41 = vector.shape_cast %40 : vector<1xf32> to vector<1x1xf32>
    %c1 = arith.constant 1 : index
    %42 = memref.load %arg1[%c1] : memref<2xi32, #tpu.memory_space<smem>>
    %43 = arith.index_cast %42 : i32 to index
    %44 = memref.load %arg2[%43] : memref<100xf32, #tpu.memory_space<smem>>
    %45 = arith.index_cast %42 : i32 to index
    %46 = memref.load %arg3[%45] : memref<100xf32, #tpu.memory_space<smem>>
    %c1_25 = arith.constant 1 : index
    %c0_26 = arith.constant 0 : index
    %c0_27 = arith.constant 0 : index
    %47 = vector.load %arg4[%c1_25, %c0_26, %c0_27] : memref<2x4x256xbf16, #tpu.memory_space<vmem>>, vector<1x4x256xbf16>
    %48 = vector.shape_cast %47 : vector<1x4x256xbf16> to vector<4x256xbf16>
    %49 = arith.extf %48 : vector<4x256xbf16> to vector<4x256xf32>
    %c1_28 = arith.constant 1 : index
    %c0_29 = arith.constant 0 : index
    %c0_30 = arith.constant 0 : index
    %50 = vector.load %arg5[%c1_28, %c0_29, %c0_30] : memref<2x4x256xbf16, #tpu.memory_space<vmem>>, vector<1x4x256xbf16>
    %51 = vector.shape_cast %50 : vector<1x4x256xbf16> to vector<4x256xbf16>
    %52 = arith.extf %51 : vector<4x256xbf16> to vector<4x256xf32>
    %c1_31 = arith.constant 1 : index
    %c0_32 = arith.constant 0 : index
    %c0_33 = arith.constant 0 : index
    %53 = vector.load %arg6[%c1_31, %c0_32, %c0_33] : memref<2x4x256xbf16, #tpu.memory_space<vmem>>, vector<1x4x256xbf16>
    %54 = vector.shape_cast %53 : vector<1x4x256xbf16> to vector<4x256xbf16>
    %55 = arith.extf %54 : vector<4x256xbf16> to vector<4x256xf32>
    %56 = vector.broadcast %44 : f32 to vector<4x256xf32>
    %57 = arith.mulf %49, %56 : vector<4x256xf32>
    %58 = vector.broadcast %46 : f32 to vector<4x256xf32>
    %59 = arith.mulf %52, %58 : vector<4x256xf32>
    %60 = arith.addf %57, %59 : vector<4x256xf32>
    %c1_34 = arith.constant 1 : index
    %c0_35 = arith.constant 0 : index
    %c0_36 = arith.constant 0 : index
    %61 = vector.load %arg11[%c1_34, %c0_35, %c0_36] : memref<2x4x256xf32, #tpu.memory_space<vmem>>, vector<1x4x256xf32>
    %62 = vector.shape_cast %61 : vector<1x4x256xf32> to vector<4x256xf32>
    %63 = vector.shape_cast %60 : vector<4x256xf32> to vector<1x4x256xf32>
    tpu.vector_store %arg11[%c1_34, %c0_35, %c0_36], %63 {strides = array<i32>} : memref<2x4x256xf32, #tpu.memory_space<vmem>>, vector<1x4x256xf32>,
    %64 = tpu.concatenate %60, %55 in 0 : vector<4x256xf32>, vector<4x256xf32> -> vector<8x256xf32>
    %c0_37 = arith.constant 0 : index
    %c0_38 = arith.constant 0 : index
    %65 = vector.load %arg7[%c0_37, %c0_38] : memref<32x8xf32, #tpu.memory_space<vmem>>, vector<32x8xf32>
    %cst_39 = arith.constant dense<0.000000e+00> : vector<32x256xf32>
    %66 = tpu.matmul %65, %64, %cst_39 {dimension_numbers = #tpu.dot_dimension_numbers<[1], [0], [0], [1], [0, 0, 1, 1], [], []>} : vector<32x8xf32>, vector<8x256xf32>, vector<32x256xf32> -> vector<32x256xf32>
    %c1_40 = arith.constant 1 : index
    %c0_41 = arith.constant 0 : index
    %c0_42 = arith.constant 0 : index
    %67 = vector.load %arg8[%c1_40, %c0_41, %c0_42] : memref<2x32x1xf32, #tpu.memory_space<vmem>>, vector<1x32x1xf32>
    %68 = vector.shape_cast %67 : vector<1x32x1xf32> to vector<32x1xf32>
    %69 = vector.broadcast %68 : vector<32x1xf32> to vector<32x256xf32>
    %70 = arith.addf %66, %69 : vector<32x256xf32>
    %cst_43 = arith.constant 0.000000e+00 : f32
    %71 = vector.broadcast %cst_43 : f32 to vector<32x256xf32>
    %72 = arith.maximumf %70, %71 : vector<32x256xf32>
    %c0_44 = arith.constant 0 : index
    %c0_45 = arith.constant 0 : index
    %73 = vector.load %arg9[%c0_44, %c0_45] : memref<4x32xf32, #tpu.memory_space<vmem>>, vector<4x32xf32>
    %cst_46 = arith.constant dense<0.000000e+00> : vector<4x256xf32>
    %74 = tpu.matmul %73, %72, %cst_46 {dimension_numbers = #tpu.dot_dimension_numbers<[1], [0], [0], [1], [0, 0, 1, 1], [], []>} : vector<4x32xf32>, vector<32x256xf32>, vector<4x256xf32> -> vector<4x256xf32>
    %c0_47 = arith.constant 0 : index
    %c0_48 = arith.constant 0 : index
    %75 = vector.load %arg10[%c0_47, %c0_48] : memref<4x1xf32, #tpu.memory_space<vmem>>, vector<4x1xf32>
    %76 = vector.broadcast %75 : vector<4x1xf32> to vector<4x256xf32>
    %77 = arith.addf %74, %76 : vector<4x256xf32>
    %78 = arith.subf %77, %52 : vector<4x256xf32>
    %79 = arith.mulf %78, %78 : vector<4x256xf32>
    %cst_49 = arith.constant dense<0.000000e+00> : vector<4xf32>
    %80 = vector.multi_reduction <add>, %79, %cst_49 [1] : vector<4x256xf32> to vector<4xf32>
    %81 = vector.shape_cast %80 : vector<4xf32> to vector<4x1xf32>
    %cst_50 = arith.constant dense<0.000000e+00> : vector<1xf32>
    %82 = vector.multi_reduction <add>, %81, %cst_50 [0] : vector<4x1xf32> to vector<1xf32>
    %83 = vector.shape_cast %82 : vector<1xf32> to vector<1x1xf32>
    %84 = arith.addf %41, %83 : vector<1x1xf32>
    %cst_51 = arith.constant 4.8828125E-4 : f32
    %85 = vector.broadcast %cst_51 : f32 to vector<1x1xf32>
    %86 = arith.mulf %84, %85 : vector<1x1xf32>
    %c0_52 = arith.constant 0 : index
    %c0_53 = arith.constant 0 : index
    %87 = vector.load %arg12[%c0_52, %c0_53] : memref<1x1xf32, #tpu.memory_space<vmem>>, vector<1x1xf32>
    tpu.vector_store %arg12[%c0_52, %c0_53], %86 {strides = array<i32>} : memref<1x1xf32, #tpu.memory_space<vmem>>, vector<1x1xf32>,
    return
  }
  func.func @transform_0(%arg0: i32) -> i32 {
    %c0_i32 = arith.constant 0 : i32
    %c0_i32_0 = arith.constant 0 : i32
    return %c0_i32 : i32
  }
  func.func @transform_1(%arg0: i32) -> i32 {
    %c0_i32 = arith.constant 0 : i32
    %c0_i32_0 = arith.constant 0 : i32
    return %c0_i32 : i32
  }
  func.func @transform_2(%arg0: i32) -> i32 {
    %c0_i32 = arith.constant 0 : i32
    %c0_i32_0 = arith.constant 0 : i32
    return %c0_i32 : i32
  }
  func.func @transform_3(%arg0: i32) -> (i32, i32, i32) {
    %c0_i32 = arith.constant 0 : i32
    %c0_i32_0 = arith.constant 0 : i32
    %c0_i32_1 = arith.constant 0 : i32
    %c0_i32_2 = arith.constant 0 : i32
    return %c0_i32, %c0_i32_0, %c0_i32_1 : i32, i32, i32
  }
  func.func @transform_4(%arg0: i32) -> (i32, i32, i32) {
    %c0_i32 = arith.constant 0 : i32
    %c0_i32_0 = arith.constant 0 : i32
    %c0_i32_1 = arith.constant 0 : i32
    %c0_i32_2 = arith.constant 0 : i32
    return %c0_i32, %c0_i32_0, %c0_i32_1 : i32, i32, i32
  }
  func.func @transform_5(%arg0: i32) -> (i32, i32, i32) {
    %c0_i32 = arith.constant 0 : i32
    %c0_i32_0 = arith.constant 0 : i32
    %c0_i32_1 = arith.constant 0 : i32
    %c0_i32_2 = arith.constant 0 : i32
    return %c0_i32, %c0_i32_0, %c0_i32_1 : i32, i32, i32
  }
  func.func @transform_6(%arg0: i32) -> (i32, i32) {
    %c0_i32 = arith.constant 0 : i32
    %c0_i32_0 = arith.constant 0 : i32
    %c0_i32_1 = arith.constant 0 : i32
    return %c0_i32, %c0_i32_0 : i32, i32
  }
  func.func @transform_7(%arg0: i32) -> (i32, i32, i32) {
    %c0_i32 = arith.constant 0 : i32
    %c0_i32_0 = arith.constant 0 : i32
    %c0_i32_1 = arith.constant 0 : i32
    %c0_i32_2 = arith.constant 0 : i32
    return %c0_i32, %c0_i32_0, %c0_i32_1 : i32, i32, i32
  }
  func.func @transform_8(%arg0: i32) -> (i32, i32) {
    %c0_i32 = arith.constant 0 : i32
    %c0_i32_0 = arith.constant 0 : i32
    %c0_i32_1 = arith.constant 0 : i32
    return %c0_i32, %c0_i32_0 : i32, i32
  }
  func.func @transform_9(%arg0: i32) -> (i32, i32) {
    %c0_i32 = arith.constant 0 : i32
    %c0_i32_0 = arith.constant 0 : i32
    %c0_i32_1 = arith.constant 0 : i32
    return %c0_i32, %c0_i32_0 : i32, i32
  }
  func.func @transform_10(%arg0: i32) -> (i32, i32, i32) {
    %c0_i32 = arith.constant 0 : i32
    %c0_i32_0 = arith.constant 0 : i32
    %c0_i32_1 = arith.constant 0 : i32
    %c0_i32_2 = arith.constant 0 : i32
    return %c0_i32, %c0_i32_0, %c0_i32_1 : i32, i32, i32
  }
  func.func @transform_11(%arg0: i32) -> (i32, i32) {
    %c0_i32 = arith.constant 0 : i32
    %c0_i32_0 = arith.constant 0 : i32
    %c0_i32_1 = arith.constant 0 : i32
    return %c0_i32, %c0_i32_0 : i32, i32
  }
}

</mosaic_0001>

<bundles_post_ra>
// kernel: tpu_custom_call.1
= control target key start
LH: loop header
LB: loop body
LE: loop exit
PB: predicated region body
PF: predicated region fallthrough
CT: control target
= control target key end

     0   :  { %17 = vsyncpa [#allocation4], 0  ;;  %s993_s0 = inlined_call_operand.vmem [shape: s32[2], index: 0, kind: input, shape index: {}]   ;;  %s994_s1 = inlined_call_operand.vmem [shape: f32[100], index: 1, kind: input, shape index: {}]   ;;  %s995_s2 = inlined_call_operand.vmem [shape: f32[100], index: 2, kind: input, shape index: {}]   ;;  %s996_s3 = inlined_call_operand.vmem [shape: bf16[2,4,256], index: 3, kind: input, shape index: {}]   ;;  %s997_s4 = inlined_call_operand.vmem [shape: bf16[2,4,256], index: 4, kind: input, shape index: {}]   ;;  %s998_s5 = inlined_call_operand.vmem [shape: bf16[2,4,256], index: 5, kind: input, shape index: {}]   ;;  %s999_s6 = inlined_call_operand.vmem [shape: f32[32,8], index: 6, kind: input, shape index: {}]   ;;  %s1000_s7 = inlined_call_operand.vmem [shape: f32[2,32,1], index: 7, kind: input, shape index: {}]   ;;  %s1001_s8 = inlined_call_operand.vmem [shape: f32[4,32], index: 8, kind: input, shape index: {}]   ;;  %s1002_s9 = inlined_call_operand.vmem [shape: f32[4,1], index: 9, kind: input, shape index: {}]   ;;  %s1003_s10 = inlined_call_operand.hbm [shape: f32[2,4,256], index: 10, kind: output, shape index: {0}]   ;;  %s1004_s11 = inlined_call_operand.hbm [shape: f32[1,1], index: 11, kind: output, shape index: {1}]  }
   0x1   :  { %18 = vsyncpa [#allocation6], 0 }
   0x2   :  { %19 = vsyncpa [#allocation3], 0  ;;  %s37_s19 = sshll.u32 %s994_s1, 4  ;;  %s38_s19 = int_to_ptr.vmem [resolvable:$true] %s37_s19 }
   0x3   :  { %20 = vsyncpa [#allocation10], 0  ;;  %s27_s22 = sshll.u32 %s993_s0, 4  ;;  %s684_s23 = scalar_lea.vmem %s38_s19, 16  ;;  %s28_s22 = int_to_ptr.vmem [resolvable:$true] %s27_s22 }
   0x4   :  { %p685_p0 = scmp.ne.s32.totalorder %s38_s19, %s684_s23  ;;  %p689_p1 = scmp.lt.s32.totalorder %s38_s19, %s38_s19 }
   0x5   :  { %p690_p2 = scmp.lt.s32.totalorder %s684_s23, %s684_s23 }
   0x7   :  { %p691_p3 = por %p690_p2, %p689_p1 }
   0x9   :  { %p692_p4 = pnand %p691_p3, %p685_p0 }
   0xb   :  { %695 = shalt.err (!%p692_p4)
}
   0xc   :  { %s772_s24 = smov [#allocation5]   ;;  %s696_s25 = scalar_lea.vmem %s28_s22, 16 }
   0xd   :  { %40 = dma.vmem_to_smem %s38_s19, 16, %s772_s24, [#allocation6]  }
   0xe   :  { %p697_p5 = scmp.ne.s32.totalorder %s28_s22, %s696_s25  ;;  %p701_p6 = scmp.lt.s32.totalorder %s28_s22, %s28_s22 }
   0xf   :  { %p702_p7 = scmp.lt.s32.totalorder %s696_s25, %s696_s25 }
  0x11   :  { %p703_p8 = por %p702_p7, %p701_p6 }
  0x13   :  { %p704_p9 = pnand %p703_p8, %p697_p5 }
  0x15   :  { %707 = shalt.err (!%p704_p9)
}
  0x16   :  { %s773_s1 = smov [#allocation2]   ;;  %s47_s27 = sshll.u32 %s995_s2, 4  ;;  %s48_s27 = int_to_ptr.vmem [resolvable:$true] %s47_s27 }
  0x17   :  { %30 = dma.vmem_to_smem %s28_s22, 16, %s773_s1, [#allocation4]  }
  0x18   :  { %s708_s28 = scalar_lea.vmem %s48_s27, 16  ;;  %p713_p11 = scmp.lt.s32.totalorder %s48_s27, %s48_s27 }
  0x19   :  { %p709_p10 = scmp.ne.s32.totalorder %s48_s27, %s708_s28  ;;  %p714_p12 = scmp.lt.s32.totalorder %s708_s28, %s708_s28 }
  0x1b   :  { %p715_p13 = por %p714_p12, %p713_p11 }
  0x1d   :  { %p716_p0 = pnand %p715_p13, %p709_p10 }
  0x1f   :  { %719 = shalt.err (!%p716_p0)
}
  0x20   :  { %s774_s29 = smov [#allocation7]  }
  0x21   :  { %50 = dma.vmem_to_smem %s48_s27, 16, %s774_s29, [#allocation6]  }
  0x22   :  { %764 = dma.done.wait [#allocation4], 16  }
  0x23   :  { %765 = vsyncadd [#allocation4], 4294967280 }
  0x24   :  { %766 = dma.done.wait [#allocation6], 32  }
  0x25   :  { %767 = vsyncadd [#allocation6], 4294967264 }
  0x26   :  { %74 = sfence }
  0x27   :  { %s75_s30 = sld [smem:[#allocation2]]  ;;  %v775_v0 = vmov 0.0   ;;  %v103_v1 = vld [vmem:[%s1000_s7] sm:$0xff]  ;;  %v105_v2 = vld [vmem:[%s1000_s7 + $0x10] sm:$0xff]  ;;  %v776_v3 = vmov 0   ;;  %v104_v4 = vld [vmem:[%s1000_s7 + $0x8] sm:$0xff] }
  0x28   :  { %204 = vmatprep.mubr.f32.mxu0 %v775_v0  ;;  %312 = vmatprep.mubr.f32.mxu1 %v775_v0  ;;  %v106_v5 = vld [vmem:[%s1000_s7 + $0x18] sm:$0xff]  ;;  %v78_v6 = vld [vmem:[%s996_s3] sm:$0xff]   ;;  %v649_v12 = vld [vmem:[%s1000_s7 + $0x28] sm:$0xff]  ;;  %vm96_vm0 = vcmask 1043456   ;;  %vm127_vm1 = vcmask 64512   ;;  %vm244_vm2 = vcmask 261120  }
  0x29   :  { %682 = vset.pattern.permute.xlu0 %v776_v3  ;;  %683 = vset.pattern.permute.xlu1 %v776_v3  ;;  %v80_v7 = vld [vmem:[%s997_s4] sm:$0xff]   ;;  %v79_v9 = vunpack.c.l.bf16 %v78_v6  ;;  %v650_v18 = vld [vmem:[%s1000_s7 + $0x30] sm:$0xff]  ;;  %v651_v19 = vld [vmem:[%s1000_s7 + $0x38] sm:$0xff]  ;;  %v343_v31 = vunpack.c.h.bf16 %v78_v6 }
  0x2a   :  { %109 = vperm.xlu0 %682, %v103_v1   ;;  %119 = vperm.xlu1 %683, %v105_v2   ;;  %v873_v8 = vld [vmem:[%s998_s5] sm:$0xff]   ;;  %v875_v10 = vunpack.c.l.bf16 %v80_v7  ;;  %v910_v28 = vld [vmem:[%s999_s6 + $0x8] sm:$0xff]  ;;  %v918_v29 = vld [vmem:[%s999_s6 + $0x10] sm:$0xff]  ;;  %v931_v32 = vunpack.c.h.bf16 %v80_v7 }
  0x2b   :  { %v648_v11 = vld [vmem:[%s1000_s7 + $0x20] sm:$0xff]  ;;  %v83_v13 = vunpack.c.l.bf16 %v873_v8  ;;  %v926_v30 = vld [vmem:[%s999_s6 + $0x18] sm:$0xff]  ;;  %v349_v1 = vunpack.c.h.bf16 %v873_v8 }
  0x2c   :  { %v238_v23 = vld [vmem:[%s1002_s9] sm:$0xf] }
  0x2d   :  { %s76_s19 = sld [smem:[#allocation5 + %s75_s30]]  ;;  %v94_v20 = vcombine.low %v83_v13, %v83_v13  ;;  %v504_v25 = vld [vmem:[%s1002_s9] sm:$0xf] }
  0x2e   :  { %s77_s20 = sld [smem:[#allocation7 + %s75_s30]]  ;;  %114 = vperm.xlu0 %682, %v104_v4   ;;  %124 = vperm.xlu1 %683, %v106_v5   ;;  %v902_v27 = vld [vmem:[%s999_s6] sm:$0xff] }
  0x32   :  { %376 = vperm.xlu0 %682, %v648_v11   ;;  %381 = vperm.xlu1 %683, %v649_v12   ;;  %v361_v11 = vcombine.low %v349_v1, %v349_v1 }
  0x33   :  { %v84_v14 = vstv %s76_s19 }
  0x34   :  { %v86_v15 = vstv %s77_s20  ;;  %v85_v16 = vmul.f32 %v84_v14, %v79_v9  ;;  %s644_s20 = sld [smem:[#allocation2 + $0x1]] }
  0x35   :  { %v87_v17 = vmul.f32 %v86_v15, %v875_v10 }
  0x36   :  { %386 = vperm.xlu0 %682, %v650_v18   ;;  %391 = vperm.xlu1 %683, %v651_v19   ;;  %v320_v18 = vcombine.high %v875_v10, %v875_v10 }
  0x37   :  { %v88_v21 = vadd.f32 %v87_v17, %v85_v16 }
  0x39   :  { %v91_v22 = vcombine.high %v88_v21, %v88_v21  ;;  %89 = vst [vmem:[#allocation8] sm:$0xff] %v88_v21  ;;  %v97_v24 = vsel %vm96_vm0, %v88_v21, %v94_v20 }
  0x3a   :  { %241 = vperm.xlu0 %682, %v238_v23   ;;  %507 = vperm.xlu1 %683, %v504_v25   ;;  %s339_s21 = sld [smem:[#allocation5 + %s644_s20]] }
  0x3b   :  { %v98_v26 = vsel %vm96_vm0, %v91_v22, %v83_v13  ;;  %s340_s22 = sld [smem:[#allocation7 + %s644_s20]]  ;;  %v237_v13 = vld [vmem:[%s1001_s8] sm:$0xf] }
  0x3c   :  { %140 = vmatprep.subr.mxu0 %v98_v26 }
  0x3d   :  { %141 = vmatpush1.msra.mxu0 %v97_v24 }
  0x3e   :  { %639 = vmatmul.mubr.msk.f32.vlgmr.msra.gmra.mrb[0].mxu0 %vm127_vm1, %v902_v27 }
  0x3f   :  { %210 = vmatprep.mubr.f32.mxu0 %v775_v0 }
  0x40   :  { %v350_v33 = vstv %s339_s21 }
  0x41   :  { %v352_v34 = vstv %s340_s22  ;;  %v351_v35 = vmul.f32 %v350_v33, %v343_v31 }
  0x42   :  { %640 = vmatmul.mubr.msk.f32.gmra.mrb[2].mxu0 %vm127_vm1, %v910_v28  ;;  %v353_v36 = vmul.f32 %v352_v34, %v931_v32 }
  0x43   :  { %216 = vmatprep.mubr.f32.mxu0 %v775_v0 }
  0x44   :  { %v354_v37 = vadd.f32 %v353_v36, %v351_v35 }
  0x46   :  { %641 = vmatmul.mubr.msk.f32.gmra.mrb[4].mxu0 %vm127_vm1, %v918_v29  ;;  %356 = vst [vmem:[#allocation8 + $0x8] sm:$0xff] %v354_v37  ;;  %v358_v4 = vcombine.high %v354_v37, %v354_v37  ;;  %v363_v8 = vsel %vm96_vm0, %v354_v37, %v361_v11 }
  0x47   :  { %222 = vmatprep.mubr.f32.mxu0 %v775_v0 }
  0x48   :  { %v364_v12 = vsel %vm96_vm0, %v358_v4, %v349_v1 }
  0x4a   :  { %642 = vmatmul.mubr.msk.f32.gmra.mrb[6].mxu0 %vm127_vm1, %v926_v30 }
  0x4b   :  { %577 = vmatprep.mubr.f32.mxu0 %v775_v0 }
  0xa9   :  { %v110_v38 = vpop.permute.xlu0 %109  ;;  %v120_v47 = vpop.permute.xlu1 %119 }
  0xad   :  { %v115_v42 = vpop.permute.xlu0 %114  ;;  %v125_v58 = vpop.permute.xlu1 %124 }
  0xb1   :  { %v377_v14 = vpop.permute.xlu0 %376 }
  0xb5   :  { %v387_v15 = vpop.permute.xlu0 %386 }
  0xb9   :  { %v242_v16 = vpop.permute.xlu0 %241 }
 0x111   :  { %v206_v39 = vpop.f32.mrb[0].mxu0 }
 0x112   :  { %v208_v40 = vpop.f32.mrb[1].mxu0  ;;  %v207_v41 = vadd.f32 %v206_v39, %v110_v38 }
 0x113   :  { %v209_v43 = vadd.f32 %v208_v40, %v110_v38 }
 0x114   :  { %v229_v49 = vmax.f32 %v207_v41, 0.0 }
 0x115   :  { %v212_v44 = vpop.f32.mrb[2].mxu0  ;;  %v230_v51 = vmax.f32 %v209_v43, 0.0 }
 0x116   :  { %v213_v45 = vadd.f32 %v212_v44, %v115_v42  ;;  %v214_v46 = vpop.f32.mrb[3].mxu0 }
 0x117   :  { %v215_v48 = vadd.f32 %v214_v46, %v115_v42 }
 0x118   :  { %v231_v50 = vmax.f32 %v213_v45, 0.0 }
 0x119   :  { %v232_v52 = vmax.f32 %v215_v48, 0.0  ;;  %v218_v53 = vpop.f32.mrb[4].mxu0 }
 0x11a   :  { %v220_v54 = vpop.f32.mrb[5].mxu0  ;;  %v659_v55 = vpack.c.bf16 %v231_v50, %v229_v49  ;;  %v219_v57 = vadd.f32 %v218_v53, %v120_v47 }
 0x11b   :  { %v657_v56 = vpack.c.bf16 %v232_v52, %v230_v51  ;;  %v221_v59 = vadd.f32 %v220_v54, %v120_v47 }
 0x11c   :  { %v233_v2 = vmax.f32 %v219_v57, 0.0 }
 0x11d   :  { %v224_v60 = vpop.f32.mrb[6].mxu0  ;;  %658 = vmatprep.subr.bf16.mxu1 %v657_v56  ;;  %v234_v5 = vmax.f32 %v221_v59, 0.0 }
 0x11e   :  { %v225_v61 = vadd.f32 %v224_v60, %v125_v58  ;;  %v226_v62 = vpop.f32.mrb[7].mxu0  ;;  %660 = vmatpush1.bf16.msra.mxu1 %v659_v55 }
 0x11f   :  { %v227_v63 = vadd.f32 %v226_v62, %v125_v58  ;;  %v503_v58 = vld [vmem:[%s1001_s8] sm:$0xf]  ;;  %s777_s8 = smov [#allocation8]  }
 0x120   :  { %v235_v3 = vmax.f32 %v225_v61, 0.0  ;;  %v585_v61 = vcombine.high %v931_v32, %v931_v32  ;;  %s612_s1 = sshll.u32 %s777_s8, 4  ;;  %s613_s1 = int_to_ptr.vmem [resolvable:$true] %s612_s1 }
 0x121   :  { %v236_v6 = vmax.f32 %v227_v63, 0.0  ;;  %s720_s0 = scalar_lea.vmem %s613_s1, 256  ;;  %p725_p2 = scmp.lt.s32.totalorder %s613_s1, %s613_s1 }
 0x122   :  { %v663_v7 = vpack.c.bf16 %v235_v3, %v233_v2  ;;  %p721_p1 = scmp.ne.s32.totalorder %s613_s1, %s720_s0  ;;  %p726_p3 = scmp.lt.s32.totalorder %s720_s0, %s720_s0 }
 0x123   :  { %v661_v9 = vpack.c.bf16 %v236_v6, %v234_v5 }
 0x124   :  { %p727_p4 = por %p726_p3, %p725_p2 }
 0x125   :  { %662 = vmatprep.subr.bf16.mxu1 %v661_v9 }
 0x126   :  { %664 = vmatpush1.bf16.msra.mxu1 %v663_v7  ;;  %p728_p5 = pnand %p727_p4, %p721_p1 }
 0x127   :  { %406 = vmatprep.subr.mxu1 %v364_v12 }
 0x129   :  { %643 = vmatmul.mubr.msk.f32.vlgmr.msra.gmra.mrb[0].mxu1 %vm244_vm2, %v237_v13 }
 0x12a   :  { %407 = vmatpush1.msra.mxu1 %v363_v8  ;;  %470 = vmatprep.mubr.f32.mxu1 %v775_v0 }
 0x12d   :  { %652 = vmatmul.mubr.msk.f32.vlgmr.msra.gmra.mrb[2].mxu1 %vm127_vm1, %v902_v27 }
 0x12e   :  { %476 = vmatprep.mubr.f32.mxu1 %v775_v0 }
 0x131   :  { %653 = vmatmul.mubr.msk.f32.gmra.mrb[4].mxu1 %vm127_vm1, %v910_v28 }
 0x132   :  { %482 = vmatprep.mubr.f32.mxu1 %v775_v0 }
 0x135   :  { %654 = vmatmul.mubr.msk.f32.gmra.mrb[6].mxu1 %vm127_vm1, %v918_v29  ;;  %v382_v29 = vpop.permute.xlu1 %381 }
 0x136   :  { %488 = vmatprep.mubr.f32.mxu1 %v775_v0 }
 0x139   :  { %655 = vmatmul.mubr.msk.f32.gmra.mrb[8].mxu1 %vm127_vm1, %v926_v30  ;;  %v392_v46 = vpop.permute.xlu1 %391 }
 0x13d   :  { %v508_v59 = vpop.permute.xlu1 %507 }
 0x1fc   :  { %v314_v17 = vpop.f32.mrb[0].mxu1 }
 0x1fd   :  { %v315_v19 = vadd.f32 %v314_v17, %v242_v16  ;;  %v316_v20 = vpop.f32.mrb[1].mxu1 }
 0x1fe   :  { %v317_v21 = vadd.f32 %v316_v20, %v242_v16 }
 0x1ff   :  { %v322_v22 = vsub.f32 %v315_v19, %v875_v10 }
 0x200   :  { %v323_v23 = vsub.f32 %v317_v21, %v320_v18  ;;  %v472_v24 = vpop.f32.mrb[2].mxu1 }
 0x201   :  { %v324_v25 = vmul.f32 %v322_v22, %v322_v22  ;;  %v474_v26 = vpop.f32.mrb[3].mxu1  ;;  %v473_v27 = vadd.f32 %v472_v24, %v377_v14 }
 0x202   :  { %v325_v0 = vmul.f32 %v323_v23, %v323_v23  ;;  %v475_v30 = vadd.f32 %v474_v26, %v377_v14 }
 0x203   :  { %v326_v28 = vsel %vm96_vm0, %v324_v25, 0.0  ;;  %v495_v38 = vmax.f32 %v473_v27, 0.0 }
 0x204   :  { %v478_v31 = vpop.f32.mrb[4].mxu1  ;;  %v327_v33 = vsel %vm96_vm0, %v325_v0, 0.0  ;;  %v496_v10 = vmax.f32 %v475_v30, 0.0 }
 0x205   :  { %v479_v34 = vadd.f32 %v478_v31, %v382_v29  ;;  %v480_v35 = vpop.f32.mrb[5].mxu1  ;;  %v328_v36 = vadd.f32 %v327_v33, %v326_v28 }
 0x206   :  { %v481_v37 = vadd.f32 %v480_v35, %v382_v29 }
 0x207   :  { %v497_v39 = vmax.f32 %v479_v34, 0.0  ;;  %329 = vadd.xlane.f32.xlu0 %v328_v36 }
 0x208   :  { %v498_v40 = vmax.f32 %v481_v37, 0.0  ;;  %v484_v41 = vpop.f32.mrb[6].mxu1 }
 0x209   :  { %v667_v42 = vpack.c.bf16 %v497_v39, %v495_v38  ;;  %v486_v43 = vpop.f32.mrb[7].mxu1  ;;  %v485_v45 = vadd.f32 %v484_v41, %v387_v15 }
 0x20a   :  { %v665_v44 = vpack.c.bf16 %v498_v40, %v496_v10  ;;  %v487_v47 = vadd.f32 %v486_v43, %v387_v15 }
 0x20b   :  { %v499_v52 = vmax.f32 %v485_v45, 0.0 }
 0x20c   :  { %v490_v48 = vpop.f32.mrb[8].mxu1  ;;  %666 = vmatprep.subr.bf16.mxu0 %v665_v44  ;;  %v500_v54 = vmax.f32 %v487_v47, 0.0 }
 0x20d   :  { %v491_v49 = vadd.f32 %v490_v48, %v392_v46  ;;  %v492_v50 = vpop.f32.mrb[9].mxu1  ;;  %668 = vmatpush1.bf16.msra.mxu0 %v667_v42 }
 0x20e   :  { %v493_v51 = vadd.f32 %v492_v50, %v392_v46 }
 0x20f   :  { %v501_v53 = vmax.f32 %v491_v49, 0.0 }
 0x210   :  { %v502_v55 = vmax.f32 %v493_v51, 0.0 }
 0x211   :  { %v671_v56 = vpack.c.bf16 %v501_v53, %v499_v52 }
 0x212   :  { %v669_v57 = vpack.c.bf16 %v502_v55, %v500_v54 }
 0x214   :  { %670 = vmatprep.subr.bf16.mxu0 %v669_v57 }
 0x215   :  { %672 = vmatpush1.bf16.msra.mxu0 %v671_v56 }
 0x218   :  { %656 = vmatmul.mubr.msk.f32.vlgmr.msra.gmra.mrb[8].mxu0 %vm244_vm2, %v503_v58 }
 0x2eb   :  { %v579_v60 = vpop.f32.mrb[8].mxu0 }
 0x2ec   :  { %v580_v62 = vadd.f32 %v579_v60, %v508_v59  ;;  %v581_v63 = vpop.f32.mrb[9].mxu0 }
 0x2ed   :  { %v582_v1 = vadd.f32 %v581_v63, %v508_v59 }
 0x2ee   :  { %v587_v2 = vsub.f32 %v580_v62, %v931_v32 }
 0x2ef   :  { %v588_v3 = vsub.f32 %v582_v1, %v585_v61 }
 0x2f0   :  { %v589_v4 = vmul.f32 %v587_v2, %v587_v2 }
 0x2f1   :  { %v590_v5 = vmul.f32 %v588_v3, %v588_v3 }
 0x2f2   :  { %v591_v6 = vsel %vm96_vm0, %v589_v4, 0.0 }
 0x2f3   :  { %v592_v7 = vsel %vm96_vm0, %v590_v5, 0.0 }
 0x2f4   :  { %v593_v9 = vadd.f32 %v592_v7, %v591_v6 }
 0x2f6   :  { %594 = vadd.xlane.f32.xlu1 %v593_v9 }
 0x2f7   :  { %731 = shalt.err (!%p728_p5)
}
 0x2f8   :  { %s732_s3 = scalar_lea.hbm %s1003_s10, 256 }
 0x2f9   :  { %p733_p6 = scmp.ne.s32.totalorder %s1003_s10, %s732_s3  ;;  %p736_p7 = scmp.lt.u32.totalorder %s732_s3, %s1003_s10 }
 0x2fb   :  { %p738_p8 = pnand %p736_p7, %p733_p6 }
 0x2fd   :  { %741 = shalt.err (!%p738_p8)
}
 0x2fe   :  { %s778_s30 = smov 128   ;;  %s779_s2 = smov 8   ;;  %v330_v32 = vpop.xlane.xlu0 %329  ;;  %vm605_vm3 = vcmask 0  }
 0x2ff   :  { %618 = dma.vmem_to_hbm [thread:$0]  %s613_s1, 256, %s1003_s10, [#allocation3], %s778_s30, %s778_s30, %s779_s2   ;;  %v331_v11 = vsel %vm96_vm0, %v330_v32, 0.0 }
 0x300   :  { %v332_v12 = vrot.slane %v331_v11, 4  ;;  %s780_s7 = smov [#allocation9]  }
 0x301   :  { %s625_s10 = sshll.u32 %s780_s7, 4  ;;  %s626_s10 = int_to_ptr.vmem [resolvable:$true] %s625_s10 }
 0x302   :  { %v333_v13 = vadd.f32 %v332_v12, %v331_v11  ;;  %s742_s14 = scalar_lea.vmem %s626_s10, 16  ;;  %s746_s15 = scalar_lea.vmem %s626_s10, 32 }
 0x303   :  { %p743_p9 = scmp.ne.s32.totalorder %s626_s10, %s742_s14  ;;  %p747_p10 = scmp.lt.s32.totalorder %s626_s10, %s626_s10 }
 0x304   :  { %v334_v8 = vrot.slane %v333_v13, 2  ;;  %p748_p11 = scmp.lt.s32.totalorder %s746_s15, %s742_s14 }
 0x306   :  { %v335_v17 = vadd.f32 %v334_v8, %v333_v13  ;;  %p749_p12 = por %p748_p11, %p747_p10 }
 0x308   :  { %v336_v20 = vrot.slane %v335_v17, 1  ;;  %p750_p13 = pnand %p749_p12, %p743_p9 }
 0x30a   :  { %v337_v23 = vadd.f32 %v336_v20, %v335_v17 }
 0x383   :  { %v595_v14 = vpop.xlane.xlu1 %594 }
 0x384   :  { %v596_v15 = vsel %vm96_vm0, %v595_v14, 0.0 }
 0x385   :  { %v597_v16 = vrot.slane %v596_v15, 4 }
 0x387   :  { %v598_v18 = vadd.f32 %v597_v16, %v596_v15 }
 0x389   :  { %v599_v19 = vrot.slane %v598_v18, 2 }
 0x38b   :  { %v600_v21 = vadd.f32 %v599_v19, %v598_v18 }
 0x38d   :  { %v601_v22 = vrot.slane %v600_v21, 1 }
 0x38f   :  { %v602_v24 = vadd.f32 %v601_v22, %v600_v21 }
 0x391   :  { %v603_v25 = vadd.f32 %v602_v24, %v337_v23 }
 0x393   :  { %v604_v26 = vmul.f32 0.00048828125, %v603_v25 }
 0x395   :  { %606 = vst.msk [vmem:[#allocation9] sm:$0x1] %vm605_vm3, %v604_v26 }
 0x396   :  { %753 = shalt.err (!%p750_p13)
}
 0x397   :  { %s754_s17 = scalar_lea.hbm %s1004_s11, 16 }
 0x398   :  { %p755_p0 = scmp.ne.s32.totalorder %s1004_s11, %s754_s17  ;;  %p758_p1 = scmp.lt.u32.totalorder %s754_s17, %s1004_s11 }
 0x39a   :  { %p760_p2 = pnand %p758_p1, %p755_p0 }
 0x39c   :  { %763 = shalt.err (!%p760_p2)
}
 0x39d   :  { %628 = dma.vmem_to_hbm [thread:$0]  %s626_s10, 16, %s1004_s11, [#allocation10]  }
 0x39e   :  { %768 = dma.done.wait [#allocation3], 256  }
 0x39f   :  { %769 = vsyncadd [#allocation3], 4294967040 }
 0x3a0   :  { %770 = dma.done.wait [#allocation10], 16  }
 0x3a1   :  { %771 = vsyncadd [#allocation10], 4294967280 }
 0x3a2   :  { %635 = vsyncpa [#allocation3], 1 }
 0x3a3   :  { %636 = vsyncpa [#allocation10], 1 }
 0x3a4   :  { %637 = vsyncpa [#allocation4], 1 }
 0x3a5   :  { %638 = vsyncpa [#allocation6], 1 }

</bundles_post_ra>
